<compile_context>
chip_gen: v5e
topology: v5e:2x2
jax: 0.10.0
libtpu: 0.0.40
codegen_flags: <defaults>
</compile_context>

<pallas_src>
import jax
import jax.numpy as jnp
from jax.experimental import pallas as pl
from jax.experimental.pallas import tpu as pltpu


def _round_up(n, m):
    return ((n + m - 1) // m) * m


def _pick_block_batch(batch, seq, target_rows=512):
    """Largest divisor of `batch` such that block_batch * seq <= target_rows."""
    bt = 1
    for cand in range(1, batch + 1):
        if batch % cand == 0 and cand * seq <= target_rows:
            bt = cand
    return bt


# ----------------------------------------------------------------------------
# Kernel 1: one full TransformerLayer (causal self-attn + LN + FFN + LN),
# fused, BT batch elements per grid step.
# ----------------------------------------------------------------------------
def transformer_layer_kernel(x_ref, wqkv_ref, w1_ref, b1_ref, w2_ref, b2_ref,
                             lnw_ref, lnb_ref, o_ref):
    BT, S, D = x_ref.shape
    M = BT * S
    cdtype = wqkv_ref.dtype                     # MXU-operand dtype (f32 or bf16)

    x = x_ref[...]                              # (BT, S, D), activation dtype
    x_f32 = x.astype(jnp.float32)

    # --- fused QKV projection on a flattened (BT*S, D) operand ---
    # weights are pre-transposed (D, 3D); 1/sqrt(D) is folded into the q cols.
    x2d = x.reshape(M, D).astype(cdtype)
    qkv = jnp.dot(x2d, wqkv_ref[...], preferred_element_type=jnp.float32)
    qkv = qkv.reshape(BT, S, 3 * D)
    q = qkv[..., :D].astype(cdtype)
    k = qkv[..., D:2 * D].astype(cdtype)
    v = qkv[..., 2 * D:].astype(cdtype)

    # --- causal self-attention (softmax math kept in f32) ---
    scores = jnp.einsum("bqd,bkd->bqk", q, k,
                        preferred_element_type=jnp.float32)      # (BT, S, S)
    row = jax.lax.broadcasted_iota(jnp.int32, (S, S), 0)
    col = jax.lax.broadcasted_iota(jnp.int32, (S, S), 1)
    causal = (row >= col)[None, :, :]
    scores = jnp.where(causal, scores, -1e30)    # large finite (NaN-safe) mask
    scores = scores - jnp.max(scores, axis=-1, keepdims=True)
    p = jnp.exp(scores)
    attn_w = p * pl.reciprocal(jnp.sum(p, axis=-1, keepdims=True), approx=True)
    attn = jnp.einsum("bqk,bkd->bqd", attn_w.astype(cdtype), v,
                      preferred_element_type=jnp.float32)        # (BT, S, D)

    lnw = lnw_ref[...].astype(jnp.float32)       # (1, D)
    lnb = lnb_ref[...].astype(jnp.float32)       # (1, D)

    def layer_norm(h):                           # f32 math (v5e-friendly)
        mu = jnp.mean(h, axis=-1, keepdims=True)
        var = jnp.mean((h - mu) * (h - mu), axis=-1, keepdims=True)
        return (h - mu) * jax.lax.rsqrt(var + 1e-5) * lnw + lnb

    # TODO(synk): dropout is a no-op here (inference semantics).
    h = layer_norm(x_f32 + attn)                 # (BT, S, D) f32

    # --- feed-forward: Linear -> ReLU -> Linear (flattened M dimension) ---
    h2d = h.reshape(M, D)
    ff = jnp.dot(h2d.astype(cdtype), w1_ref[...],
                 preferred_element_type=jnp.float32) + b1_ref[...]
    ff = jnp.maximum(ff, 0.0)
    ff = jnp.dot(ff.astype(cdtype), w2_ref[...],
                 preferred_element_type=jnp.float32) + b2_ref[...]

    out = layer_norm(h + ff.reshape(BT, S, D))
    o_ref[...] = out.astype(o_ref.dtype)

    # TODO(synk): for max_length >= ~512, tile the KV axis flash-style instead
    # of materializing the (S, S) score matrix.


def transformer_layer(x, lp):
    """x: (B, S, D); lp: dict of pre-transposed layer weights."""
    B, S, D = x.shape
    BT = _pick_block_batch(B, S)
    const2 = lambda b: (0, 0)
    return pl.pallas_call(
        transformer_layer_kernel,
        out_shape=jax.ShapeDtypeStruct((B, S, D), x.dtype),
        grid_spec=pltpu.PrefetchScalarGridSpec(
            num_scalar_prefetch=0,
            grid=(B // BT,),
            in_specs=[
                pl.BlockSpec((BT, S, D), lambda b: (b, 0, 0)),    # x
                pl.BlockSpec(lp["wqkv"].shape, const2),           # fused Wqkv
                pl.BlockSpec(lp["w1"].shape, const2),             # W1 (in,out)
                pl.BlockSpec(lp["b1"].shape, const2),             # b1
                pl.BlockSpec(lp["w2"].shape, const2),             # W2 (in,out)
                pl.BlockSpec(lp["b2"].shape, const2),             # b2
                pl.BlockSpec(lp["ln_w"].shape, const2),           # ln_w
                pl.BlockSpec(lp["ln_b"].shape, const2),           # ln_b
            ],
            out_specs=pl.BlockSpec((BT, S, D), lambda b: (b, 0, 0)),
        ),
        compiler_params=pltpu.CompilerParams(
            dimension_semantics=("parallel",)),
    )(x, lp["wqkv"], lp["w1"], lp["b1"], lp["w2"], lp["b2"],
      lp["ln_w"], lp["ln_b"])


# ----------------------------------------------------------------------------
# Kernel 2: logits = x @ item_embedding[:-1].T, tiled over the item axis with
# a lane-dense (multiple-of-128) output tile.  The table is pre-transposed to
# (D, N_pad) and zero-padded once in the wrapper.
# ----------------------------------------------------------------------------
def logits_kernel(x_ref, embt_ref, o_ref):
    BT, S, D = x_ref.shape
    x2d = x_ref[...].reshape(BT * S, D)
    out = jnp.dot(x2d, embt_ref[...], preferred_element_type=jnp.float32)
    o_ref[...] = out.reshape(BT, S, -1).astype(o_ref.dtype)


def compute_logits(x, emb_t):
    """x: (B, S, D); emb_t: (D, N_pad) with N_pad a multiple of the item tile."""
    B, S, D = x.shape
    N_pad = emb_t.shape[1]
    TN = min(1024, N_pad)                 # lane-dense item tile (multiple of 128)
    BT = _pick_block_batch(B, S)
    return pl.pallas_call(
        logits_kernel,
        out_shape=jax.ShapeDtypeStruct((B, S, N_pad), jnp.float32),
        grid_spec=pltpu.PrefetchScalarGridSpec(
            num_scalar_prefetch=0,
            grid=(B // BT, N_pad // TN),
            in_specs=[
                pl.BlockSpec((BT, S, D), lambda b, n: (b, 0, 0)),  # x resident per b
                pl.BlockSpec((D, TN), lambda b, n: (0, n)),        # streamed table
            ],
            out_specs=pl.BlockSpec((BT, S, TN), lambda b, n: (b, 0, n)),
        ),
        compiler_params=pltpu.CompilerParams(
            dimension_semantics=("parallel", "arbitrary")),
    )(x, emb_t)


# ----------------------------------------------------------------------------
# Parameter init (PyTorch-layout params, mirrors SASRec.__init__/_init_weights;
# LN / bias values are randomized slightly so the kernel paths are exercised).
# ----------------------------------------------------------------------------
def init_params(key, num_items, embedding_dim, max_length, num_layers, std=0.001):
    keys = jax.random.split(key, 3 + num_layers)
    D = embedding_dim

    # pretrained item embeddings (the "checkpoint" passed to __init__)
    pretrained = jax.random.normal(keys[0], (num_items, D), jnp.float32) * 0.1

    item_emb = jax.random.normal(keys[1], (num_items + 1, D), jnp.float32) * std
    item_emb = item_emb.at[num_items].set(0.0)              # padding_idx zeroed
    item_emb = item_emb.at[:num_items].set(pretrained)      # overwrite with pretrained

    pos_emb = jax.random.normal(keys[2], (max_length, D), jnp.float32) * std

    layers = []
    for li in range(num_layers):
        lk = jax.random.split(keys[3 + li], 9)
        layers.append(dict(
            wq=jax.random.normal(lk[0], (D, D), jnp.float32) * std,   # (out, in)
            wk=jax.random.normal(lk[1], (D, D), jnp.float32) * std,
            wv=jax.random.normal(lk[2], (D, D), jnp.float32) * std,
            w1=jax.random.normal(lk[3], (D, D), jnp.float32) * std,
            b1=jax.random.normal(lk[4], (1, D), jnp.float32) * 0.01,
            w2=jax.random.normal(lk[5], (D, D), jnp.float32) * std,
            b2=jax.random.normal(lk[6], (1, D), jnp.float32) * 0.01,
            ln_w=1.0 + jax.random.normal(lk[7], (1, D), jnp.float32) * 0.1,
            ln_b=jax.random.normal(lk[8], (1, D), jnp.float32) * 0.01,
        ))
    return dict(item_emb=item_emb, pos_emb=pos_emb, layers=layers)


# ----------------------------------------------------------------------------
# One-time re-layout of params for the kernels:
#   * transpose Linear weights to (in, out), fuse Wq/Wk/Wv, fold 1/sqrt(D)
#   * transpose + zero-pad the logits table to (D, N_pad) lane-dense tiles
#   * optionally store MXU operands (weights, embeddings, activations) in bf16
# ----------------------------------------------------------------------------
def prepare_params(params, compute_dtype=jnp.float32):
    D = params["pos_emb"].shape[1]
    scale = 1.0 / (D ** 0.5)

    layers = []
    for lp in params["layers"]:
        wqkv = jnp.concatenate(
            [lp["wq"].T * scale, lp["wk"].T, lp["wv"].T], axis=1)   # (D, 3D)
        layers.append(dict(
            wqkv=wqkv.astype(compute_dtype),
            w1=lp["w1"].T.astype(compute_dtype),
            b1=lp["b1"].astype(jnp.float32),
            w2=lp["w2"].T.astype(compute_dtype),
            b2=lp["b2"].astype(jnp.float32),
            ln_w=lp["ln_w"].astype(jnp.float32),
            ln_b=lp["ln_b"].astype(jnp.float32),
        ))

    item_emb = params["item_emb"]
    num_items = item_emb.shape[0] - 1
    # lane-dense item tiling: pad N to a multiple of TN (TN a multiple of 128)
    n128 = _round_up(num_items, 128)
    tn = min(1024, n128)
    n_pad = _round_up(num_items, tn)
    emb_t = jnp.zeros((D, n_pad), jnp.float32)
    emb_t = emb_t.at[:, :num_items].set(item_emb[:num_items].T)

    # TODO(synk): D is not padded to 128 here; doing so needs a masked LayerNorm.
    return dict(
        item_emb_lookup=item_emb.astype(compute_dtype),   # (N+1, D), padding row kept
        pos_emb=params["pos_emb"].astype(compute_dtype),
        emb_t=emb_t.astype(compute_dtype),                # (D, N_pad)
        layers=layers,
    )


# ----------------------------------------------------------------------------
# SASRec forward (glue in JAX, hot path in Pallas)
# ----------------------------------------------------------------------------
@jax.jit
def sasrec_forward(prepared, item_ids):
    B, S = item_ids.shape
    num_items = prepared["item_emb_lookup"].shape[0] - 1

    x = jnp.take(prepared["item_emb_lookup"], item_ids, axis=0)   # (B, S, D)
    x = x + prepared["pos_emb"][:S][None, :, :]

    # pad the sequence axis to a sublane-friendly multiple of 16; padded rows
    # never influence real rows (causal mask) and are sliced off at the end.
    S_pad = _round_up(S, 16)
    if S_pad != S:
        x = jnp.pad(x, ((0, 0), (0, S_pad - S), (0, 0)))

    for lp in prepared["layers"]:
        x = transformer_layer(x, lp)

    logits = compute_logits(x, prepared["emb_t"])                 # (B, S_pad, N_pad)
    return logits[:, :S, :num_items]


# ----------------------------------------------------------------------------
# Pure-JAX reference (PyTorch semantics) for correctness check
# ----------------------------------------------------------------------------
def sasrec_reference(params, item_ids):
    B, S = item_ids.shape
    x = jnp.take(params["item_emb"], item_ids, axis=0) + params["pos_emb"][:S][None]
    for lp in params["layers"]:
        D = x.shape[-1]
        q = x @ lp["wq"].T
        k = x @ lp["wk"].T
        v = x @ lp["wv"].T
        scores = jnp.einsum("bqd,bkd->bqk", q, k) / (D ** 0.5)
        mask = jnp.tril(jnp.ones((S, S), bool))[None]
        scores = jnp.where(mask, scores, -jnp.inf)
        w = jax.nn.softmax(scores, axis=-1)
        attn = jnp.einsum("bqk,bkd->bqd", w, v)

        def ln(h):
            mu = jnp.mean(h, -1, keepdims=True)
            var = jnp.mean((h - mu) ** 2, -1, keepdims=True)
            return (h - mu) * jax.lax.rsqrt(var + 1e-5) * lp["ln_w"][0] + lp["ln_b"][0]

        h = ln(x + attn)
        ff = jnp.maximum(h @ lp["w1"].T + lp["b1"][0], 0.0) @ lp["w2"].T + lp["b2"][0]
        x = ln(h + ff)
    return jnp.einsum("bsd,nd->bsn", x, params["item_emb"][:-1])


if __name__ == "__main__":
    num_items = 10
    embedding_dim = 32
    max_length = 50
    num_layers = 2
    batch, seq_len = 2, 8

    key = jax.random.PRNGKey(0)
    pkey, ikey = jax.random.split(key)
    params = init_params(pkey, num_items, embedding_dim, max_length, num_layers)

    # item ids in [0, num_items] — num_items is the padding index.
    item_ids = jax.random.randint(ikey, (batch, seq_len), 0, num_items + 1, jnp.int32)

    ref = sasrec_reference(params, item_ids)

    # f32 path: strict check vs. the PyTorch-semantics reference.
    prepared_f32 = prepare_params(params, compute_dtype=jnp.float32)
    logits = jax.block_until_ready(sasrec_forward(prepared_f32, item_ids))
    assert logits.shape == (batch, seq_len, num_items)
    assert jnp.allclose(logits, ref, atol=1e-4, rtol=1e-4), "f32 mismatch vs reference"

    # bf16 MXU-operand path (f32 accumulation, f32 LN/softmax math): loose check.
    prepared_bf16 = prepare_params(params, compute_dtype=jnp.bfloat16)
    logits_bf16 = jax.block_until_ready(sasrec_forward(prepared_bf16, item_ids))
    assert logits_bf16.shape == (batch, seq_len, num_items)
    assert bool(jnp.all(jnp.isfinite(logits_bf16)))
    assert jnp.allclose(logits_bf16, ref, atol=1e-1, rtol=0.0), "bf16 path drifted"

    print("KERNEL_OK")
</pallas_src>

<mosaic_0001>
module attributes {stable_mosaic.version = 11 : i64} {
  func.func @transformer_layer_kernel(%arg0: i32, %arg1: memref<2x16x32xf32, #tpu.memory_space<vmem>>, %arg2: memref<32x96xf32, #tpu.memory_space<vmem>>, %arg3: memref<32x32xf32, #tpu.memory_space<vmem>>, %arg4: memref<1x32xf32, #tpu.memory_space<vmem>>, %arg5: memref<32x32xf32, #tpu.memory_space<vmem>>, %arg6: memref<1x32xf32, #tpu.memory_space<vmem>>, %arg7: memref<1x32xf32, #tpu.memory_space<vmem>>, %arg8: memref<1x32xf32, #tpu.memory_space<vmem>>, %arg9: memref<2x16x32xf32, #tpu.memory_space<vmem>>) attributes {dimension_semantics = [#tpu.dimension_semantics<parallel>], iteration_bounds = array<i64: 1>, scalar_prefetch = 0 : i64, scratch_operands = 0 : i64, tpu.core_type = #tpu.core_type<tc>, window_params = [{transform_indices = @transform_0, window_bounds = array<i64: 2, 16, 32>}, {pipeline_mode = #tpu.pipeline_mode<synchronous>, transform_indices = @transform_1, window_bounds = array<i64: 32, 96>}, {pipeline_mode = #tpu.pipeline_mode<synchronous>, transform_indices = @transform_2, window_bounds = array<i64: 32, 32>}, {pipeline_mode = #tpu.pipeline_mode<synchronous>, transform_indices = @transform_3, window_bounds = array<i64: 1, 32>}, {pipeline_mode = #tpu.pipeline_mode<synchronous>, transform_indices = @transform_4, window_bounds = array<i64: 32, 32>}, {pipeline_mode = #tpu.pipeline_mode<synchronous>, transform_indices = @transform_5, window_bounds = array<i64: 1, 32>}, {pipeline_mode = #tpu.pipeline_mode<synchronous>, transform_indices = @transform_6, window_bounds = array<i64: 1, 32>}, {pipeline_mode = #tpu.pipeline_mode<synchronous>, transform_indices = @transform_7, window_bounds = array<i64: 1, 32>}, {transform_indices = @transform_8, window_bounds = array<i64: 2, 16, 32>}]} {
    %c0 = arith.constant 0 : index
    %c0_0 = arith.constant 0 : index
    %c0_1 = arith.constant 0 : index
    %0 = vector.load %arg1[%c0, %c0_0, %c0_1] : memref<2x16x32xf32, #tpu.memory_space<vmem>>, vector<2x16x32xf32>
    %1 = vector.shape_cast %0 : vector<2x16x32xf32> to vector<32x32xf32>
    %c0_2 = arith.constant 0 : index
    %c0_3 = arith.constant 0 : index
    %2 = vector.load %arg2[%c0_2, %c0_3] : memref<32x96xf32, #tpu.memory_space<vmem>>, vector<32x96xf32>
    %cst = arith.constant dense<0.000000e+00> : vector<32x96xf32>
    %3 = tpu.matmul %1, %2, %cst {dimension_numbers = #tpu.dot_dimension_numbers<[1], [0], [0], [1], [0, 0, 1, 1], [], []>} : vector<32x32xf32>, vector<32x96xf32>, vector<32x96xf32> -> vector<32x96xf32>
    %4 = vector.shape_cast %3 : vector<32x96xf32> to vector<2x16x96xf32>
    %5 = vector.extract_strided_slice %4 {offsets = [0, 0, 0], sizes = [2, 16, 32], strides = [1, 1, 1]} : vector<2x16x96xf32> to vector<2x16x32xf32>
    %6 = vector.extract_strided_slice %4 {offsets = [0, 0, 32], sizes = [2, 16, 32], strides = [1, 1, 1]} : vector<2x16x96xf32> to vector<2x16x32xf32>
    %7 = vector.extract_strided_slice %4 {offsets = [0, 0, 64], sizes = [2, 16, 32], strides = [1, 1, 1]} : vector<2x16x96xf32> to vector<2x16x32xf32>
    "tpu.trace_start"() <{level = 10 : i32, message = "bqd,bkd->bqk"}> : () -> ()
    %cst_4 = arith.constant dense<0.000000e+00> : vector<2x16x16xf32>
    %8 = tpu.matmul %5, %6, %cst_4 {dimension_numbers = #tpu.dot_dimension_numbers<[2], [2], [1], [1], [0, 0, 0, 1, 1, 1], [0], [0]>} : vector<2x16x32xf32>, vector<2x16x32xf32>, vector<2x16x16xf32> -> vector<2x16x16xf32>
    "tpu.trace_stop"() : () -> ()
    %9 = tpu.iota {dimensions = array<i32: 0>} : vector<16x16xi32>
    %10 = tpu.iota {dimensions = array<i32: 1>} : vector<16x16xi32>
    %11 = arith.cmpi sge, %9, %10 : vector<16x16xi32>
    %12 = vector.shape_cast %11 : vector<16x16xi1> to vector<1x16x16xi1>
    %cst_5 = arith.constant -1.000000e+30 : f32
    %13 = vector.shape_cast %12 : vector<1x16x16xi1> to vector<1x16x16xi1>
    %14 = vector.broadcast %13 : vector<1x16x16xi1> to vector<2x16x16xi1>
    %15 = vector.broadcast %cst_5 : f32 to vector<2x16x16xf32>
    %16 = arith.select %14, %8, %15 : vector<2x16x16xi1>, vector<2x16x16xf32>
    %cst_6 = arith.constant dense<0xFF800000> : vector<2x16xf32>
    %17 = vector.multi_reduction <maximumf>, %16, %cst_6 [2] : vector<2x16x16xf32> to vector<2x16xf32>
    %18 = vector.shape_cast %17 : vector<2x16xf32> to vector<2x16x1xf32>
    %19 = vector.broadcast %18 : vector<2x16x1xf32> to vector<2x16x16xf32>
    %20 = arith.subf %16, %19 : vector<2x16x16xf32>
    %21 = math.exp %20 : vector<2x16x16xf32>
    %cst_7 = arith.constant dense<0.000000e+00> : vector<2x16xf32>
    %22 = vector.multi_reduction <add>, %21, %cst_7 [2] : vector<2x16x16xf32> to vector<2x16xf32>
    %23 = vector.shape_cast %22 : vector<2x16xf32> to vector<2x16x1xf32>
    %24 = tpu.reciprocal %23 {approx = true} : vector<2x16x1xf32> -> vector<2x16x1xf32>
    %25 = vector.broadcast %24 : vector<2x16x1xf32> to vector<2x16x16xf32>
    %26 = arith.mulf %21, %25 : vector<2x16x16xf32>
    "tpu.trace_start"() <{level = 10 : i32, message = "bqk,bkd->bqd"}> : () -> ()
    %cst_8 = arith.constant dense<0.000000e+00> : vector<2x16x32xf32>
    %27 = tpu.matmul %26, %7, %cst_8 {dimension_numbers = #tpu.dot_dimension_numbers<[2], [1], [1], [2], [0, 0, 0, 1, 1, 2], [0], [0]>} : vector<2x16x16xf32>, vector<2x16x32xf32>, vector<2x16x32xf32> -> vector<2x16x32xf32>
    "tpu.trace_stop"() : () -> ()
    %c0_9 = arith.constant 0 : index
    %c0_10 = arith.constant 0 : index
    %28 = vector.load %arg7[%c0_9, %c0_10] : memref<1x32xf32, #tpu.memory_space<vmem>>, vector<1x32xf32>
    %c0_11 = arith.constant 0 : index
    %c0_12 = arith.constant 0 : index
    %29 = vector.load %arg8[%c0_11, %c0_12] : memref<1x32xf32, #tpu.memory_space<vmem>>, vector<1x32xf32>
    %30 = arith.addf %0, %27 : vector<2x16x32xf32>
    %cst_13 = arith.constant dense<0.000000e+00> : vector<2x16xf32>
    %31 = vector.multi_reduction <add>, %30, %cst_13 [2] : vector<2x16x32xf32> to vector<2x16xf32>
    %32 = vector.shape_cast %31 : vector<2x16xf32> to vector<2x16x1xf32>
    %cst_14 = arith.constant 3.200000e+01 : f32
    %33 = vector.broadcast %cst_14 : f32 to vector<2x16x1xf32>
    %34 = arith.divf %32, %33 : vector<2x16x1xf32>
    %35 = vector.broadcast %34 : vector<2x16x1xf32> to vector<2x16x32xf32>
    %36 = arith.subf %30, %35 : vector<2x16x32xf32>
    %37 = vector.broadcast %34 : vector<2x16x1xf32> to vector<2x16x32xf32>
    %38 = arith.subf %30, %37 : vector<2x16x32xf32>
    %39 = arith.mulf %36, %38 : vector<2x16x32xf32>
    %cst_15 = arith.constant dense<0.000000e+00> : vector<2x16xf32>
    %40 = vector.multi_reduction <add>, %39, %cst_15 [2] : vector<2x16x32xf32> to vector<2x16xf32>
    %41 = vector.shape_cast %40 : vector<2x16xf32> to vector<2x16x1xf32>
    %cst_16 = arith.constant 3.200000e+01 : f32
    %42 = vector.broadcast %cst_16 : f32 to vector<2x16x1xf32>
    %43 = arith.divf %41, %42 : vector<2x16x1xf32>
    %44 = vector.broadcast %34 : vector<2x16x1xf32> to vector<2x16x32xf32>
    %45 = arith.subf %30, %44 : vector<2x16x32xf32>
    %cst_17 = arith.constant 9.99999974E-6 : f32
    %46 = vector.broadcast %cst_17 : f32 to vector<2x16x1xf32>
    %47 = arith.addf %43, %46 : vector<2x16x1xf32>
    %48 = math.rsqrt %47 : vector<2x16x1xf32>
    %49 = vector.broadcast %48 : vector<2x16x1xf32> to vector<2x16x32xf32>
    %50 = arith.mulf %45, %49 : vector<2x16x32xf32>
    %51 = vector.shape_cast %28 : vector<1x32xf32> to vector<1x1x32xf32>
    %52 = vector.broadcast %51 : vector<1x1x32xf32> to vector<2x16x32xf32>
    %53 = arith.mulf %50, %52 : vector<2x16x32xf32>
    %54 = vector.shape_cast %29 : vector<1x32xf32> to vector<1x1x32xf32>
    %55 = vector.broadcast %54 : vector<1x1x32xf32> to vector<2x16x32xf32>
    %56 = arith.addf %53, %55 : vector<2x16x32xf32>
    %57 = vector.shape_cast %56 : vector<2x16x32xf32> to vector<32x32xf32>
    %c0_18 = arith.constant 0 : index
    %c0_19 = arith.constant 0 : index
    %58 = vector.load %arg3[%c0_18, %c0_19] : memref<32x32xf32, #tpu.memory_space<vmem>>, vector<32x32xf32>
    %cst_20 = arith.constant dense<0.000000e+00> : vector<32x32xf32>
    %59 = tpu.matmul %57, %58, %cst_20 {dimension_numbers = #tpu.dot_dimension_numbers<[1], [0], [0], [1], [0, 0, 1, 1], [], []>} : vector<32x32xf32>, vector<32x32xf32>, vector<32x32xf32> -> vector<32x32xf32>
    %c0_21 = arith.constant 0 : index
    %c0_22 = arith.constant 0 : index
    %60 = vector.load %arg4[%c0_21, %c0_22] : memref<1x32xf32, #tpu.memory_space<vmem>>, vector<1x32xf32>
    %61 = vector.broadcast %60 : vector<1x32xf32> to vector<32x32xf32>
    %62 = arith.addf %59, %61 : vector<32x32xf32>
    %cst_23 = arith.constant 0.000000e+00 : f32
    %63 = vector.broadcast %cst_23 : f32 to vector<32x32xf32>
    %64 = arith.maximumf %62, %63 : vector<32x32xf32>
    %c0_24 = arith.constant 0 : index
    %c0_25 = arith.constant 0 : index
    %65 = vector.load %arg5[%c0_24, %c0_25] : memref<32x32xf32, #tpu.memory_space<vmem>>, vector<32x32xf32>
    %cst_26 = arith.constant dense<0.000000e+00> : vector<32x32xf32>
    %66 = tpu.matmul %64, %65, %cst_26 {dimension_numbers = #tpu.dot_dimension_numbers<[1], [0], [0], [1], [0, 0, 1, 1], [], []>} : vector<32x32xf32>, vector<32x32xf32>, vector<32x32xf32> -> vector<32x32xf32>
    %c0_27 = arith.constant 0 : index
    %c0_28 = arith.constant 0 : index
    %67 = vector.load %arg6[%c0_27, %c0_28] : memref<1x32xf32, #tpu.memory_space<vmem>>, vector<1x32xf32>
    %68 = vector.broadcast %67 : vector<1x32xf32> to vector<32x32xf32>
    %69 = arith.addf %66, %68 : vector<32x32xf32>
    %70 = vector.shape_cast %69 : vector<32x32xf32> to vector<2x16x32xf32>
    %71 = arith.addf %56, %70 : vector<2x16x32xf32>
    %cst_29 = arith.constant dense<0.000000e+00> : vector<2x16xf32>
    %72 = vector.multi_reduction <add>, %71, %cst_29 [2] : vector<2x16x32xf32> to vector<2x16xf32>
    %73 = vector.shape_cast %72 : vector<2x16xf32> to vector<2x16x1xf32>
    %cst_30 = arith.constant 3.200000e+01 : f32
    %74 = vector.broadcast %cst_30 : f32 to vector<2x16x1xf32>
    %75 = arith.divf %73, %74 : vector<2x16x1xf32>
    %76 = vector.broadcast %75 : vector<2x16x1xf32> to vector<2x16x32xf32>
    %77 = arith.subf %71, %76 : vector<2x16x32xf32>
    %78 = vector.broadcast %75 : vector<2x16x1xf32> to vector<2x16x32xf32>
    %79 = arith.subf %71, %78 : vector<2x16x32xf32>
    %80 = arith.mulf %77, %79 : vector<2x16x32xf32>
    %cst_31 = arith.constant dense<0.000000e+00> : vector<2x16xf32>
    %81 = vector.multi_reduction <add>, %80, %cst_31 [2] : vector<2x16x32xf32> to vector<2x16xf32>
    %82 = vector.shape_cast %81 : vector<2x16xf32> to vector<2x16x1xf32>
    %cst_32 = arith.constant 3.200000e+01 : f32
    %83 = vector.broadcast %cst_32 : f32 to vector<2x16x1xf32>
    %84 = arith.divf %82, %83 : vector<2x16x1xf32>
    %85 = vector.broadcast %75 : vector<2x16x1xf32> to vector<2x16x32xf32>
    %86 = arith.subf %71, %85 : vector<2x16x32xf32>
    %cst_33 = arith.constant 9.99999974E-6 : f32
    %87 = vector.broadcast %cst_33 : f32 to vector<2x16x1xf32>
    %88 = arith.addf %84, %87 : vector<2x16x1xf32>
    %89 = math.rsqrt %88 : vector<2x16x1xf32>
    %90 = vector.broadcast %89 : vector<2x16x1xf32> to vector<2x16x32xf32>
    %91 = arith.mulf %86, %90 : vector<2x16x32xf32>
    %92 = vector.shape_cast %28 : vector<1x32xf32> to vector<1x1x32xf32>
    %93 = vector.broadcast %92 : vector<1x1x32xf32> to vector<2x16x32xf32>
    %94 = arith.mulf %91, %93 : vector<2x16x32xf32>
    %95 = vector.shape_cast %29 : vector<1x32xf32> to vector<1x1x32xf32>
    %96 = vector.broadcast %95 : vector<1x1x32xf32> to vector<2x16x32xf32>
    %97 = arith.addf %94, %96 : vector<2x16x32xf32>
    %c0_34 = arith.constant 0 : index
    %c0_35 = arith.constant 0 : index
    %c0_36 = arith.constant 0 : index
    %98 = vector.load %arg9[%c0_34, %c0_35, %c0_36] : memref<2x16x32xf32, #tpu.memory_space<vmem>>, vector<2x16x32xf32>
    tpu.vector_store %arg9[%c0_34, %c0_35, %c0_36], %97 {strides = array<i32>} : memref<2x16x32xf32, #tpu.memory_space<vmem>>, vector<2x16x32xf32>,
    return
  }
  func.func @transform_0(%arg0: i32) -> (i32, i32, i32) {
    %c0_i32 = arith.constant 0 : i32
    %c0_i32_0 = arith.constant 0 : i32
    %c0_i32_1 = arith.constant 0 : i32
    return %arg0, %c0_i32, %c0_i32_0 : i32, i32, i32
  }
  func.func @transform_1(%arg0: i32) -> (i32, i32) {
    %c0_i32 = arith.constant 0 : i32
    %c0_i32_0 = arith.constant 0 : i32
    %c0_i32_1 = arith.constant 0 : i32
    return %c0_i32, %c0_i32_0 : i32, i32
  }
  func.func @transform_2(%arg0: i32) -> (i32, i32) {
    %c0_i32 = arith.constant 0 : i32
    %c0_i32_0 = arith.constant 0 : i32
    %c0_i32_1 = arith.constant 0 : i32
    return %c0_i32, %c0_i32_0 : i32, i32
  }
  func.func @transform_3(%arg0: i32) -> (i32, i32) {
    %c0_i32 = arith.constant 0 : i32
    %c0_i32_0 = arith.constant 0 : i32
    %c0_i32_1 = arith.constant 0 : i32
    return %c0_i32, %c0_i32_0 : i32, i32
  }
  func.func @transform_4(%arg0: i32) -> (i32, i32) {
    %c0_i32 = arith.constant 0 : i32
    %c0_i32_0 = arith.constant 0 : i32
    %c0_i32_1 = arith.constant 0 : i32
    return %c0_i32, %c0_i32_0 : i32, i32
  }
  func.func @transform_5(%arg0: i32) -> (i32, i32) {
    %c0_i32 = arith.constant 0 : i32
    %c0_i32_0 = arith.constant 0 : i32
    %c0_i32_1 = arith.constant 0 : i32
    return %c0_i32, %c0_i32_0 : i32, i32
  }
  func.func @transform_6(%arg0: i32) -> (i32, i32) {
    %c0_i32 = arith.constant 0 : i32
    %c0_i32_0 = arith.constant 0 : i32
    %c0_i32_1 = arith.constant 0 : i32
    return %c0_i32, %c0_i32_0 : i32, i32
  }
  func.func @transform_7(%arg0: i32) -> (i32, i32) {
    %c0_i32 = arith.constant 0 : i32
    %c0_i32_0 = arith.constant 0 : i32
    %c0_i32_1 = arith.constant 0 : i32
    return %c0_i32, %c0_i32_0 : i32, i32
  }
  func.func @transform_8(%arg0: i32) -> (i32, i32, i32) {
    %c0_i32 = arith.constant 0 : i32
    %c0_i32_0 = arith.constant 0 : i32
    %c0_i32_1 = arith.constant 0 : i32
    return %arg0, %c0_i32, %c0_i32_0 : i32, i32, i32
  }
}

module attributes {stable_mosaic.version = 11 : i64} {
  func.func @logits_kernel(%arg0: i32, %arg1: i32, %arg2: memref<2x16x32xf32, #tpu.memory_space<vmem>>, %arg3: memref<32x128xf32, #tpu.memory_space<vmem>>, %arg4: memref<2x16x128xf32, #tpu.memory_space<vmem>>) attributes {dimension_semantics = [#tpu.dimension_semantics<parallel>, #tpu.dimension_semantics<arbitrary>], iteration_bounds = array<i64: 1, 1>, scalar_prefetch = 0 : i64, scratch_operands = 0 : i64, tpu.core_type = #tpu.core_type<tc>, window_params = [{transform_indices = @transform_0, window_bounds = array<i64: 2, 16, 32>}, {transform_indices = @transform_1, window_bounds = array<i64: 32, 128>}, {transform_indices = @transform_2, window_bounds = array<i64: 2, 16, 128>}]} {
    %c0 = arith.constant 0 : index
    %c0_0 = arith.constant 0 : index
    %c0_1 = arith.constant 0 : index
    %0 = vector.load %arg2[%c0, %c0_0, %c0_1] : memref<2x16x32xf32, #tpu.memory_space<vmem>>, vector<2x16x32xf32>
    %1 = vector.shape_cast %0 : vector<2x16x32xf32> to vector<32x32xf32>
    %c0_2 = arith.constant 0 : index
    %c0_3 = arith.constant 0 : index
    %2 = vector.load %arg3[%c0_2, %c0_3] : memref<32x128xf32, #tpu.memory_space<vmem>>, vector<32x128xf32>
    %cst = arith.constant dense<0.000000e+00> : vector<32x128xf32>
    %3 = tpu.matmul %1, %2, %cst {dimension_numbers = #tpu.dot_dimension_numbers<[1], [0], [0], [1], [0, 0, 1, 1], [], []>} : vector<32x32xf32>, vector<32x128xf32>, vector<32x128xf32> -> vector<32x128xf32>
    %4 = vector.shape_cast %3 : vector<32x128xf32> to vector<2x16x128xf32>
    %c0_4 = arith.constant 0 : index
    %c0_5 = arith.constant 0 : index
    %c0_6 = arith.constant 0 : index
    %5 = vector.load %arg4[%c0_4, %c0_5, %c0_6] : memref<2x16x128xf32, #tpu.memory_space<vmem>>, vector<2x16x128xf32>
    tpu.vector_store %arg4[%c0_4, %c0_5, %c0_6], %4 {strides = array<i32>} : memref<2x16x128xf32, #tpu.memory_space<vmem>>, vector<2x16x128xf32>,
    return
  }
  func.func @transform_0(%arg0: i32, %arg1: i32) -> (i32, i32, i32) {
    %c0_i32 = arith.constant 0 : i32
    %c0_i32_0 = arith.constant 0 : i32
    %c0_i32_1 = arith.constant 0 : i32
    return %arg0, %c0_i32, %c0_i32_0 : i32, i32, i32
  }
  func.func @transform_1(%arg0: i32, %arg1: i32) -> (i32, i32) {
    %c0_i32 = arith.constant 0 : i32
    %c0_i32_0 = arith.constant 0 : i32
    return %c0_i32, %arg1 : i32, i32
  }
  func.func @transform_2(%arg0: i32, %arg1: i32) -> (i32, i32, i32) {
    %c0_i32 = arith.constant 0 : i32
    %c0_i32_0 = arith.constant 0 : i32
    return %arg0, %c0_i32, %arg1 : i32, i32, i32
  }
}

</mosaic_0001>

<bundles_post_ra>
// kernel: sasrec_forward.5
= control target key start
LH: loop header
LB: loop body
LE: loop exit
PB: predicated region body
PF: predicated region fallthrough
CT: control target
= control target key end

     0   :  { %vm19_vm0 = vcmask 261120   ;;  %s136_s1 = inlined_call_operand.vmem [shape: f32[32,128], index: 1, kind: input, shape index: {}]   ;;  %s137_s0 = inlined_call_operand.vmem [shape: f32[2,16,32], index: 0, kind: input, shape index: {}]   ;;  %s138_s2 = inlined_call_operand.vmem [shape: f32[2,16,128], index: 2, kind: output, shape index: {}]  }
   0x1   :  { %v18_v0 = vld [vmem:[%s136_s1 + $0x18] sm:$0xff]  ;;  %v17_v1 = vld [vmem:[%s136_s1 + $0x10] sm:$0xff]  ;;  %v16_v2 = vld [vmem:[%s136_s1 + $0x8] sm:$0xff] }
   0x2   :  { %74 = vmatpush.msra.mxu2 %v18_v0  ;;  %75 = vmatpush.msra.mxu3 %v18_v0  ;;  %v15_v3 = vld [vmem:[%s136_s1] sm:$0xff]  ;;  %v13_v4 = vld [vmem:[%s137_s0 + $0x10] sm:$0xff]  ;;  %v14_v5 = vld [vmem:[%s137_s0 + $0x18] sm:$0xff] }
   0x3   :  { %44 = vmatpush.msra.mxu0 %v18_v0  ;;  %73 = vmatpush.msra.mxu1 %v18_v0  ;;  %v11_v6 = vld [vmem:[%s137_s0] sm:$0xff]  ;;  %v12_v7 = vld [vmem:[%s137_s0 + $0x8] sm:$0xff] }
   0x4   :  { %77 = vmatpush.msra.mxu2 %v17_v1  ;;  %78 = vmatpush.msra.mxu3 %v17_v1 }
   0x5   :  { %45 = vmatpush.msra.mxu0 %v17_v1  ;;  %76 = vmatpush.msra.mxu1 %v17_v1 }
   0x6   :  { %80 = vmatpush.msra.mxu2 %v16_v2  ;;  %81 = vmatpush.msra.mxu3 %v16_v2 }
   0x7   :  { %46 = vmatpush.msra.mxu0 %v16_v2  ;;  %79 = vmatpush.msra.mxu1 %v16_v2 }
   0x8   :  { %83 = vmatpush.msra.mxu2 %v15_v3  ;;  %84 = vmatpush.msra.mxu3 %v15_v3 }
   0x9   :  { %71 = vmatmul.msk.f32.vlgmr.msra.gmra.mxu2 %vm19_vm0, %v13_v4  ;;  %72 = vmatmul.msk.f32.vlgmr.msra.gmra.mxu3 %vm19_vm0, %v14_v5 }
   0xa   :  { %47 = vmatpush.msra.mxu0 %v15_v3  ;;  %82 = vmatpush.msra.mxu1 %v15_v3 }
   0xb   :  { %69 = vmatmul.msk.f32.vlgmr.msra.gmra.mxu0 %vm19_vm0, %v11_v6  ;;  %70 = vmatmul.msk.f32.vlgmr.msra.gmra.mxu1 %vm19_vm0, %v12_v7 }
  0x88   :  { %v49_v8 = vpop.f32.mrf.mxu0  ;;  %v52_v9 = vpop.f32.mrf.mxu1 }
  0x89   :  { %61 = vst [vmem:[%s138_s2] sm:$0xff] %v49_v8 }
  0x8a   :  { %62 = vst [vmem:[%s138_s2 + $0x8] sm:$0xff] %v52_v9 }
  0x8c   :  { %v55_v10 = vpop.f32.mrf.mxu2  ;;  %v58_v11 = vpop.f32.mrf.mxu3 }
  0x8d   :  { %63 = vst [vmem:[%s138_s2 + $0x10] sm:$0xff] %v55_v10 }
  0x8e   :  { %64 = vst [vmem:[%s138_s2 + $0x18] sm:$0xff] %v58_v11 }

// kernel: sasrec_forward.3
= control target key start
LH: loop header
LB: loop body
LE: loop exit
PB: predicated region body
PF: predicated region fallthrough
CT: control target
= control target key end

     0   :  { %vm37_vm0 = vcmask 261120   ;;  %s687_s20 = smov 96   ;;  %v153_v16 = vlaneseq  ;;  %vm168_vm2 = vcmask 130048   ;;  %s951_s1 = inlined_call_operand.vmem [shape: f32[32,96], index: 1, kind: input, shape index: {}]   ;;  %s952_s0 = inlined_call_operand.vmem [shape: f32[2,16,32], index: 0, kind: input, shape index: {}]   ;;  %s953_s6 = inlined_call_operand.vmem [shape: f32[1,32], index: 6, kind: input, shape index: {}]   ;;  %s954_s7 = inlined_call_operand.vmem [shape: f32[1,32], index: 7, kind: input, shape index: {}]   ;;  %s955_s3 = inlined_call_operand.vmem [shape: f32[1,32], index: 3, kind: input, shape index: {}]   ;;  %s956_s2 = inlined_call_operand.vmem [shape: f32[32,32], index: 2, kind: input, shape index: {}]   ;;  %s957_s4 = inlined_call_operand.vmem [shape: f32[32,32], index: 4, kind: input, shape index: {}]   ;;  %s958_s5 = inlined_call_operand.vmem [shape: f32[1,32], index: 5, kind: input, shape index: {}]   ;;  %s959_s8 = inlined_call_operand.vmem [shape: f32[2,16,32], index: 8, kind: output, shape index: {}]  }
   0x1   :  { %v36_v0 = vld [vmem:[%s951_s1 + $0x18] sm:$0xff]  ;;  %v35_v1 = vld [vmem:[%s951_s1 + $0x10] sm:$0xff]  ;;  %v34_v2 = vld [vmem:[%s951_s1 + $0x8] sm:$0xff] }
   0x2   :  { %62 = vmatpush.msra.mxu0 %v36_v0  ;;  %v33_v3 = vld [vmem:[%s951_s1] sm:$0xff]  ;;  %v757_v5 = vld [vmem:[%s952_s0 + $0x8] sm:$0xff]  ;;  %v764_v6 = vld [vmem:[%s952_s0 + $0x10] sm:$0xff]  ;;  %v154_v17 = vshrl.u32 %v153_v16, 7  ;;  %v157_v18 = vand.u32 127, %v153_v16 }
   0x3   :  { %v750_v4 = vld [vmem:[%s952_s0] sm:$0xff]  ;;  %v771_v7 = vld [vmem:[%s952_s0 + $0x18] sm:$0xff]  ;;  %s688_s0 = smov 64  }
   0x4   :  { %63 = vmatpush.msra.mxu0 %v35_v1  ;;  %vm158_vm1 = vcmp.ge.s32.totalorder %v154_v17, %v157_v18  ;;  %v155_v20 = vadd.s32 8, %v154_v17 }
   0x6   :  { %64 = vmatpush.msra.mxu0 %v34_v2  ;;  %vm159_vm3 = vcmp.ge.s32.totalorder %v155_v20, %v157_v18 }
   0x8   :  { %65 = vmatpush.msra.mxu0 %v33_v3 }
   0x9   :  { %608 = vmatmul.msk.f32.vlgmr.msra.gmra.mxu0 %vm37_vm0, %v750_v4 }
  0x11   :  { %609 = vmatmul.msk.f32.gmra.mxu0 %vm37_vm0, %v757_v5 }
  0x19   :  { %610 = vmatmul.msk.f32.gmra.mxu0 %vm37_vm0, %v764_v6 }
  0x21   :  { %611 = vmatmul.msk.f32.gmra.mxu0 %vm37_vm0, %v771_v7 }
  0x86   :  { %v67_v8 = vpop.f32.mrf.mxu0 }
  0x8e   :  { %v70_v9 = vpop.f32.mrf.mxu0 }
  0x8f   :  { %83 = vrot.lane.b32.xlu0 %v70_v9, %s687_s20  ;;  %v639_v32 = vpack.i.bf16 %v67_v8, %v70_v9 }
  0x96   :  { %v73_v10 = vpop.f32.mrf.mxu0 }
  0x97   :  { %81 = vrot.lane.b32.xlu0 %v67_v8, %s687_s20 }
  0x9e   :  { %v76_v11 = vpop.f32.mrf.mxu0 }
  0x9f   :  { %120 = vrot.lane.b32.xlu1 %v76_v11, %s687_s20  ;;  %v644_v33 = vpack.i.bf16 %v73_v10, %v76_v11 }
  0xa7   :  { %118 = vrot.lane.b32.xlu1 %v73_v10, %s687_s20 }
 0x101   :  { %v84_v12 = vpop.permute.xlu0 %83 }
 0x102   :  { %612 = vmatpush.xpose.msk.msra.mxu1 %vm37_vm0, %v84_v12  ;;  %632 = vmatpush.xpose.msk.msra.mxu3 %vm37_vm0, %v84_v12 }
 0x109   :  { %v82_v13 = vpop.permute.xlu0 %81 }
 0x10a   :  { %613 = vmatpush.xpose.msk.msra.mxu1 %vm37_vm0, %v82_v13  ;;  %633 = vmatpush.xpose.msk.msra.mxu3 %vm37_vm0, %v82_v13 }
 0x10d   :  { %614 = vmatmul.msk.f32.vlgmr.msra.gmra.mxu1 %vm37_vm0, %v67_v8  ;;  %615 = vmatmul.msk.f32.vlgmr.msra.gmra.mxu3 %vm37_vm0, %v70_v9 }
 0x111   :  { %v121_v14 = vpop.permute.xlu1 %120 }
 0x112   :  { %616 = vmatpush.xpose.msk.msrb.mxu0 %vm37_vm0, %v121_v14  ;;  %634 = vmatpush.xpose.msk.msra.mxu2 %vm37_vm0, %v121_v14 }
 0x119   :  { %v119_v15 = vpop.permute.xlu1 %118 }
 0x11a   :  { %617 = vmatpush.xpose.msk.msrb.mxu0 %vm37_vm0, %v119_v15  ;;  %635 = vmatpush.xpose.msk.msra.mxu2 %vm37_vm0, %v119_v15 }
 0x11d   :  { %618 = vmatmul.msk.f32.vlgmr.msrb.gmra.mxu0 %vm37_vm0, %v73_v10  ;;  %619 = vmatmul.msk.f32.vlgmr.msra.gmra.mxu2 %vm37_vm0, %v76_v11 }
 0x18a   :  { %v110_v19 = vpop.f32.mrf.mxu1 }
 0x18b   :  { %v164_v21 = vsel %vm158_vm1, %v110_v19, -1e+30 }
 0x18c   :  { %v169_v22 = vsel %vm168_vm2, %v164_v21, -inf }
 0x18d   :  { %170 = vmax.xlane.f32.xlu2 %v169_v22 }
 0x190   :  { %v113_v23 = vpop.f32.mrf.mxu3 }
 0x191   :  { %v165_v24 = vsel %vm159_vm3, %v113_v23, -1e+30  ;;  %v689_v23 = vmov 32.0  }
 0x192   :  { %v172_v25 = vsel %vm168_vm2, %v165_v24, -inf }
 0x195   :  { %173 = vmax.xlane.f32.xlu2 %v172_v25 }
 0x19a   :  { %v147_v26 = vpop.f32.mrf.mxu0 }
 0x19b   :  { %v166_v27 = vsel %vm158_vm1, %v147_v26, -1e+30 }
 0x19c   :  { %v175_v28 = vsel %vm168_vm2, %v166_v27, -inf }
 0x19d   :  { %176 = vmax.xlane.f32.xlu0 %v175_v28 }
 0x1a0   :  { %v150_v29 = vpop.f32.mrf.mxu2 }
 0x1a1   :  { %v167_v30 = vsel %vm159_vm3, %v150_v29, -1e+30 }
 0x1a2   :  { %v178_v31 = vsel %vm168_vm2, %v167_v30, -inf }
 0x1a3   :  { %179 = vmax.xlane.f32.xlu1 %v178_v31 }
 0x1ad   :  { %640 = vrot.lane.b32.xlu2 %v639_v32, %s688_s0 }
 0x1bc   :  { %645 = vrot.lane.b32.xlu1 %v644_v33, %s688_s0 }
 0x200   :  { %v171_v34 = vpop.xlane.xlu2 %170 }
 0x201   :  { %v181_v35 = vsub.f32 %v164_v21, %v171_v34 }
 0x203   :  { %v185_v36 = vmul.f32 1.442695, %v181_v35 }
 0x205   :  { %653 = vpow2.f32 %v185_v36 }
 0x208   :  { %v174_v37 = vpop.xlane.xlu2 %173 }
 0x209   :  { %v182_v38 = vsub.f32 %v165_v24, %v174_v37 }
 0x20b   :  { %v654_v39 = vpop.eup %653  ;;  %v187_v40 = vmul.f32 1.442695, %v182_v38 }
 0x20c   :  { %v193_v41 = vsel %vm168_vm2, %v654_v39, 0.0 }
 0x20d   :  { %655 = vpow2.f32 %v187_v40  ;;  %194 = vadd.xlane.f32.xlu2 %v193_v41 }
 0x210   :  { %v641_v42 = vpop.permute.xlu2 %640  ;;  %v177_v43 = vpop.xlane.xlu0 %176 }
 0x211   :  { %v183_v44 = vsub.f32 %v166_v27, %v177_v43  ;;  %v642_v45 = vunpack.i.l.bf16 %v641_v42  ;;  %v643_v48 = vunpack.i.h.bf16 %v641_v42 }
 0x213   :  { %v656_v46 = vpop.eup %655  ;;  %v189_v47 = vmul.f32 1.442695, %v183_v44  ;;  %239 = vmatpush.msrb.mxu3 %v642_v45 }
 0x214   :  { %v196_v49 = vsel %vm168_vm2, %v656_v46, 0.0 }
 0x215   :  { %657 = vpow2.f32 %v189_v47  ;;  %197 = vadd.xlane.f32.xlu2 %v196_v49  ;;  %240 = vmatpush.msrb.mxu3 %v643_v48  ;;  %v401_v47 = vld [vmem:[%s956_s2 + $0x18] sm:$0xff]  ;;  %v400_v48 = vld [vmem:[%s956_s2 + $0x10] sm:$0xff]  ;;  %v399_v49 = vld [vmem:[%s956_s2 + $0x8] sm:$0xff] }
 0x216   :  { %v180_v50 = vpop.xlane.xlu1 %179  ;;  %430 = vmatpush.msrb.mxu1 %v401_v47 }
 0x217   :  { %v184_v51 = vsub.f32 %v167_v30, %v180_v50  ;;  %v398_v50 = vld [vmem:[%s956_s2] sm:$0xff] }
 0x218   :  { %431 = vmatpush.msrb.mxu1 %v400_v48 }
 0x219   :  { %v191_v52 = vmul.f32 1.442695, %v184_v51 }
 0x21a   :  { %432 = vmatpush.msrb.mxu1 %v399_v49 }
 0x21b   :  { %v658_v53 = vpop.eup %657  ;;  %659 = vpow2.f32 %v191_v52 }
 0x21c   :  { %v199_v54 = vsel %vm168_vm2, %v658_v53, 0.0  ;;  %433 = vmatpush.msrb.mxu1 %v398_v50 }
 0x21d   :  { %200 = vadd.xlane.f32.xlu0 %v199_v54 }
 0x221   :  { %v660_v55 = vpop.eup %659 }
 0x222   :  { %v202_v56 = vsel %vm168_vm2, %v660_v55, 0.0 }
 0x225   :  { %203 = vadd.xlane.f32.xlu0 %v202_v56 }
 0x22e   :  { %v646_v57 = vpop.permute.xlu1 %645 }
 0x22f   :  { %v647_v58 = vunpack.i.l.bf16 %v646_v57  ;;  %v648_v59 = vunpack.i.h.bf16 %v646_v57 }
 0x231   :  { %274 = vmatpush.msra.mxu3 %v647_v58 }
 0x233   :  { %275 = vmatpush.msra.mxu3 %v648_v59 }
 0x280   :  { %v195_v60 = vpop.xlane.xlu2 %194 }
 0x281   :  { %661 = vrcp.f32 %v195_v60 }
 0x287   :  { %v662_v61 = vpop.eup %661 }
 0x288   :  { %v198_v62 = vpop.xlane.xlu2 %197  ;;  %v209_v63 = vmul.f32 %v662_v61, %v654_v39 }
 0x289   :  { %663 = vrcp.f32 %v198_v62 }
 0x28a   :  { %620 = vmatmul.msk.f32.vlgmr.msrb.gmra.mxu3 %vm168_vm2, %v209_v63 }
 0x28f   :  { %v664_v0 = vpop.eup %663 }
 0x290   :  { %v201_v1 = vpop.xlane.xlu0 %200  ;;  %v210_v2 = vmul.f32 %v664_v0, %v656_v46 }
 0x291   :  { %665 = vrcp.f32 %v201_v1 }
 0x292   :  { %621 = vmatmul.msk.f32.gmra.mxu3 %vm168_vm2, %v210_v2 }
 0x297   :  { %v666_v3 = vpop.eup %665 }
 0x298   :  { %v211_v8 = vmul.f32 %v666_v3, %v658_v53  ;;  %v204_v9 = vpop.xlane.xlu0 %203 }
 0x299   :  { %667 = vrcp.f32 %v204_v9  ;;  %v454_v9 = vld [vmem:[%s957_s4 + $0x18] sm:$0xff] }
 0x29a   :  { %622 = vmatmul.msk.f32.vlgmr.msra.gmra.mxu3 %vm168_vm2, %v211_v8  ;;  %669 = vrcp.f32 %v689_v23  ;;  %v851_v8 = vld [vmem:[%s953_s6] ss:$0 sm:$0xff]  ;;  %483 = vmatpush.msrb.mxu2 %v454_v9 }
 0x29f   :  { %v668_v10 = vpop.eup %667 }
 0x2a0   :  { %v212_v11 = vmul.f32 %v668_v10, %v660_v55  ;;  %v670_v24 = vpop.eup %669 }
 0x2a1   :  { %v302_v25 = vmul.f32 32.0, %v670_v24  ;;  %vm306_vm4 = vweird.f32 %v670_v24 }
 0x2a2   :  { %623 = vmatmul.msk.f32.gmra.mxu3 %vm168_vm2, %v212_v11 }
 0x30d   :  { %v242_v12 = vpop.f32.mrf.mxu3 }
 0x30e   :  { %v285_v13 = vadd.f32 %v242_v12, %v750_v4 }
 0x310   :  { %v289_v14 = vsel %vm37_vm0, %v285_v13, 0.0 }
 0x311   :  { %290 = vadd.xlane.f32.xlu0 %v289_v14 }
 0x315   :  { %v245_v15 = vpop.f32.mrf.mxu3 }
 0x316   :  { %v286_v16 = vadd.f32 %v245_v15, %v757_v5  ;;  %v303_v5 = vsub.f32 1.0, %v302_v25 }
 0x318   :  { %v292_v17 = vsel %vm37_vm0, %v286_v16, 0.0  ;;  %v304_v26 = vmul.f32 %v670_v24, %v303_v5 }
 0x319   :  { %293 = vadd.xlane.f32.xlu0 %v292_v17 }
 0x31a   :  { %v305_v27 = vadd.f32 %v670_v24, %v304_v26 }
 0x31c   :  { %v807_v28 = vsel %vm306_vm4, %v670_v24, %v305_v27 }
 0x31d   :  { %v277_v18 = vpop.f32.mrf.mxu3 }
 0x31e   :  { %v287_v19 = vadd.f32 %v277_v18, %v764_v6 }
 0x320   :  { %v295_v20 = vsel %vm37_vm0, %v287_v19, 0.0 }
 0x321   :  { %296 = vadd.xlane.f32.xlu1 %v295_v20 }
 0x325   :  { %v280_v21 = vpop.f32.mrf.mxu3 }
 0x326   :  { %v288_v22 = vadd.f32 %v280_v21, %v771_v7 }
 0x328   :  { %v298_v4 = vsel %vm37_vm0, %v288_v22, 0.0 }
 0x329   :  { %299 = vadd.xlane.f32.xlu2 %v298_v4 }
 0x384   :  { %v291_v6 = vpop.xlane.xlu0 %290 }
 0x385   :  { %v308_v29 = vmul.f32 %v807_v28, %v291_v6 }
 0x387   :  { %v810_v30 = vsub.f32 %v285_v13, %v308_v29  ;;  %v860_v13 = vld [vmem:[%s954_s7] ss:$0 sm:$0xff] }
 0x389   :  { %v316_v7 = vmul.f32 %v810_v30, %v810_v30 }
 0x38b   :  { %v320_v31 = vsel %vm37_vm0, %v316_v7, 0.0 }
 0x38c   :  { %321 = vadd.xlane.f32.xlu0 %v320_v31  ;;  %v294_v32 = vpop.xlane.xlu0 %293 }
 0x38d   :  { %v309_v33 = vmul.f32 %v807_v28, %v294_v32 }
 0x38f   :  { %v816_v34 = vsub.f32 %v286_v16, %v309_v33 }
 0x391   :  { %v317_v35 = vmul.f32 %v816_v34, %v816_v34 }
 0x393   :  { %v323_v36 = vsel %vm37_vm0, %v317_v35, 0.0 }
 0x394   :  { %v297_v37 = vpop.xlane.xlu1 %296  ;;  %324 = vadd.xlane.f32.xlu2 %v323_v36 }
 0x395   :  { %v310_v38 = vmul.f32 %v807_v28, %v297_v37 }
 0x397   :  { %v822_v39 = vsub.f32 %v287_v19, %v310_v38 }
 0x399   :  { %v318_v40 = vmul.f32 %v822_v39, %v822_v39 }
 0x39b   :  { %v326_v41 = vsel %vm37_vm0, %v318_v40, 0.0 }
 0x39c   :  { %v300_v42 = vpop.xlane.xlu2 %299  ;;  %327 = vadd.xlane.f32.xlu0 %v326_v41 }
 0x39d   :  { %v311_v43 = vmul.f32 %v807_v28, %v300_v42 }
 0x39f   :  { %v828_v44 = vsub.f32 %v288_v22, %v311_v43 }
 0x3a1   :  { %v319_v45 = vmul.f32 %v828_v44, %v828_v44 }
 0x3a3   :  { %v329_v46 = vsel %vm37_vm0, %v319_v45, 0.0  ;;  %v452_v45 = vld [vmem:[%s957_s4 + $0x8] sm:$0xff] }
 0x3a4   :  { %330 = vadd.xlane.f32.xlu2 %v329_v46  ;;  %v651_v46 = vld [vmem:[%s955_s3] ss:$0 sm:$0xff] }
 0x3ff   :  { %v322_v51 = vpop.xlane.xlu0 %321 }
 0x400   :  { %v332_v52 = vmul.f32 %v322_v51, %v807_v28 }
 0x402   :  { %v336_v53 = vadd.f32 1e-05, %v332_v52 }
 0x404   :  { %671 = vrsqrt.f32 %v336_v53  ;;  %vm346_vm6 = vweird.f32 %v336_v53 }
 0x407   :  { %v325_v54 = vpop.xlane.xlu2 %324 }
 0x408   :  { %v333_v55 = vmul.f32 %v325_v54, %v807_v28 }
 0x40a   :  { %v672_v56 = vpop.eup %671  ;;  %v337_v57 = vadd.f32 1e-05, %v333_v55 }
 0x40b   :  { %v341_v58 = vmul.f32 %v672_v56, %v336_v53  ;;  %vm347_vm5 = vweird.f32 %v672_v56 }
 0x40c   :  { %673 = vrsqrt.f32 %v337_v57  ;;  %vm348_vm7 = vmor %vm346_vm6, %vm347_vm5  ;;  %vm356_vm9 = vweird.f32 %v337_v57 }
 0x40d   :  { %v342_v59 = vmul.f32 %v672_v56, %v341_v58 }
 0x40f   :  { %v343_v60 = vmul.f32 0.5, %v342_v59  ;;  %v328_v61 = vpop.xlane.xlu0 %327  ;;  %v652_v59 = vld [vmem:[%s958_s5] ss:$0 sm:$0xff] }
 0x410   :  { %v334_v62 = vmul.f32 %v328_v61, %v807_v28 }
 0x411   :  { %v344_v63 = vsub.f32 1.5, %v343_v60 }
 0x412   :  { %v674_v0 = vpop.eup %673  ;;  %v338_v1 = vadd.f32 1e-05, %v334_v62 }
 0x413   :  { %v345_v2 = vmul.f32 %v672_v56, %v344_v63  ;;  %v351_v3 = vmul.f32 %v674_v0, %v337_v57  ;;  %vm357_vm8 = vweird.f32 %v674_v0 }
 0x414   :  { %675 = vrsqrt.f32 %v338_v1  ;;  %vm358_vm10 = vmor %vm356_vm9, %vm357_vm8  ;;  %vm366_vm12 = vweird.f32 %v338_v1 }
 0x415   :  { %v349_v10 = vsel %vm348_vm7, %v672_v56, %v345_v2  ;;  %v352_v11 = vmul.f32 %v674_v0, %v351_v3 }
 0x416   :  { %v380_v12 = vmul.f32 %v349_v10, %v810_v30 }
 0x417   :  { %v353_v14 = vmul.f32 0.5, %v352_v11  ;;  %v331_v15 = vpop.xlane.xlu2 %330 }
 0x418   :  { %v335_v16 = vmul.f32 %v331_v15, %v807_v28  ;;  %v387_v17 = vmul.f32 %v851_v8, %v380_v12 }
 0x419   :  { %v354_v18 = vsub.f32 1.5, %v353_v14 }
 0x41a   :  { %v676_v19 = vpop.eup %675  ;;  %v339_v20 = vadd.f32 1e-05, %v335_v16  ;;  %v865_v21 = vadd.f32 %v860_v13, %v387_v17 }
 0x41b   :  { %v355_v22 = vmul.f32 %v674_v0, %v354_v18  ;;  %v361_v4 = vmul.f32 %v676_v19, %v338_v1  ;;  %vm367_vm11 = vweird.f32 %v676_v19 }
 0x41c   :  { %677 = vrsqrt.f32 %v339_v20  ;;  %624 = vmatmul.msk.f32.vlgmr.msrb.gmra.mxu1 %vm37_vm0, %v865_v21  ;;  %vm368_vm13 = vmor %vm366_vm12, %vm367_vm11  ;;  %vm376_vm15 = vweird.f32 %v339_v20 }
 0x41d   :  { %v359_v23 = vsel %vm358_vm10, %v674_v0, %v355_v22  ;;  %v362_v24 = vmul.f32 %v676_v19, %v361_v4 }
 0x41e   :  { %v381_v25 = vmul.f32 %v359_v23, %v816_v34 }
 0x41f   :  { %v363_v5 = vmul.f32 0.5, %v362_v24 }
 0x420   :  { %v388_v26 = vmul.f32 %v851_v8, %v381_v25 }
 0x421   :  { %v364_v27 = vsub.f32 1.5, %v363_v5 }
 0x422   :  { %v678_v6 = vpop.eup %677  ;;  %v395_v29 = vadd.f32 %v860_v13, %v388_v26 }
 0x423   :  { %v365_v30 = vmul.f32 %v676_v19, %v364_v27  ;;  %v371_v7 = vmul.f32 %v678_v6, %v339_v20  ;;  %vm377_vm14 = vweird.f32 %v678_v6 }
 0x424   :  { %625 = vmatmul.msk.f32.gmra.mxu1 %vm37_vm0, %v395_v29  ;;  %vm378_vm1 = vmor %vm376_vm15, %vm377_vm14 }
 0x425   :  { %v369_v31 = vsel %vm368_vm13, %v676_v19, %v365_v30  ;;  %v372_v32 = vmul.f32 %v678_v6, %v371_v7 }
 0x426   :  { %v382_v33 = vmul.f32 %v369_v31, %v822_v39  ;;  %v453_v39 = vld [vmem:[%s957_s4 + $0x10] sm:$0xff] }
 0x427   :  { %v373_v35 = vmul.f32 0.5, %v372_v32  ;;  %484 = vmatpush.msrb.mxu2 %v453_v39 }
 0x428   :  { %v389_v34 = vmul.f32 %v851_v8, %v382_v33 }
 0x429   :  { %v374_v36 = vsub.f32 1.5, %v373_v35  ;;  %485 = vmatpush.msrb.mxu2 %v452_v45 }
 0x42a   :  { %v396_v37 = vadd.f32 %v860_v13, %v389_v34 }
 0x42b   :  { %v375_v38 = vmul.f32 %v678_v6, %v374_v36 }
 0x42c   :  { %626 = vmatmul.msk.f32.gmra.mxu1 %vm37_vm0, %v396_v37 }
 0x42d   :  { %v379_v40 = vsel %vm378_vm1, %v678_v6, %v375_v38 }
 0x42e   :  { %v383_v41 = vmul.f32 %v379_v40, %v828_v44  ;;  %v451_v44 = vld [vmem:[%s957_s4] sm:$0xff] }
 0x42f   :  { %486 = vmatpush.msrb.mxu2 %v451_v44 }
 0x430   :  { %v390_v42 = vmul.f32 %v851_v8, %v383_v41 }
 0x432   :  { %v397_v43 = vadd.f32 %v860_v13, %v390_v42 }
 0x434   :  { %627 = vmatmul.msk.f32.gmra.mxu1 %vm37_vm0, %v397_v43 }
 0x499   :  { %v435_v47 = vpop.f32.mrf.mxu1 }
 0x49a   :  { %v436_v48 = vadd.f32 %v651_v46, %v435_v47 }
 0x49c   :  { %v447_v49 = vmax.f32 %v436_v48, 0.0 }
 0x49e   :  { %628 = vmatmul.msk.f32.vlgmr.msrb.gmra.mxu2 %vm37_vm0, %v447_v49 }
 0x4a1   :  { %v438_v50 = vpop.f32.mrf.mxu1 }
 0x4a2   :  { %v439_v51 = vadd.f32 %v651_v46, %v438_v50 }
 0x4a4   :  { %v448_v52 = vmax.f32 %v439_v51, 0.0 }
 0x4a6   :  { %629 = vmatmul.msk.f32.gmra.mxu2 %vm37_vm0, %v448_v52 }
 0x4a9   :  { %v441_v53 = vpop.f32.mrf.mxu1 }
 0x4aa   :  { %v442_v54 = vadd.f32 %v651_v46, %v441_v53 }
 0x4ac   :  { %v449_v55 = vmax.f32 %v442_v54, 0.0 }
 0x4ae   :  { %630 = vmatmul.msk.f32.gmra.mxu2 %vm37_vm0, %v449_v55 }
 0x4b1   :  { %v444_v56 = vpop.f32.mrf.mxu1 }
 0x4b2   :  { %v445_v57 = vadd.f32 %v651_v46, %v444_v56 }
 0x4b4   :  { %v450_v58 = vmax.f32 %v445_v57, 0.0 }
 0x4b6   :  { %631 = vmatmul.msk.f32.gmra.mxu2 %vm37_vm0, %v450_v58 }
 0x521   :  { %v488_v60 = vpop.f32.mrf.mxu2 }
 0x522   :  { %v489_v61 = vadd.f32 %v652_v59, %v488_v60 }
 0x524   :  { %v500_v62 = vadd.f32 %v489_v61, %v865_v21 }
 0x526   :  { %v504_v63 = vsel %vm37_vm0, %v500_v62, 0.0 }
 0x527   :  { %505 = vadd.xlane.f32.xlu0 %v504_v63 }
 0x529   :  { %v491_v0 = vpop.f32.mrf.mxu2 }
 0x52a   :  { %v492_v1 = vadd.f32 %v652_v59, %v491_v0 }
 0x52c   :  { %v501_v2 = vadd.f32 %v492_v1, %v395_v29 }
 0x52e   :  { %v507_v3 = vsel %vm37_vm0, %v501_v2, 0.0 }
 0x52f   :  { %508 = vadd.xlane.f32.xlu2 %v507_v3 }
 0x531   :  { %v494_v9 = vpop.f32.mrf.mxu2 }
 0x532   :  { %v495_v10 = vadd.f32 %v652_v59, %v494_v9 }
 0x534   :  { %v502_v11 = vadd.f32 %v495_v10, %v396_v37 }
 0x536   :  { %v510_v12 = vsel %vm37_vm0, %v502_v11, 0.0 }
 0x537   :  { %511 = vadd.xlane.f32.xlu0 %v510_v12 }
 0x539   :  { %v497_v14 = vpop.f32.mrf.mxu2 }
 0x53a   :  { %v498_v15 = vadd.f32 %v652_v59, %v497_v14 }
 0x53c   :  { %v503_v16 = vadd.f32 %v498_v15, %v397_v43 }
 0x53e   :  { %v513_v17 = vsel %vm37_vm0, %v503_v16, 0.0 }
 0x53f   :  { %514 = vadd.xlane.f32.xlu2 %v513_v17 }
 0x59a   :  { %v506_v18 = vpop.xlane.xlu0 %505 }
 0x59b   :  { %v516_v19 = vmul.f32 %v506_v18, %v807_v28 }
 0x59d   :  { %v520_v20 = vsub.f32 %v500_v62, %v516_v19 }
 0x59f   :  { %v524_v21 = vmul.f32 %v520_v20, %v520_v20 }
 0x5a1   :  { %v528_v22 = vsel %vm37_vm0, %v524_v21, 0.0 }
 0x5a2   :  { %v509_v4 = vpop.xlane.xlu2 %508  ;;  %529 = vadd.xlane.f32.xlu0 %v528_v22 }
 0x5a3   :  { %v517_v23 = vmul.f32 %v509_v4, %v807_v28 }
 0x5a5   :  { %v521_v24 = vsub.f32 %v501_v2, %v517_v23 }
 0x5a7   :  { %v525_v25 = vmul.f32 %v521_v24, %v521_v24 }
 0x5a9   :  { %v531_v5 = vsel %vm37_vm0, %v525_v25, 0.0 }
 0x5aa   :  { %532 = vadd.xlane.f32.xlu1 %v531_v5  ;;  %v512_v26 = vpop.xlane.xlu0 %511 }
 0x5ab   :  { %v518_v27 = vmul.f32 %v512_v26, %v807_v28 }
 0x5ad   :  { %v910_v6 = vsub.f32 %v502_v11, %v518_v27 }
 0x5af   :  { %v526_v29 = vmul.f32 %v910_v6, %v910_v6 }
 0x5b1   :  { %v534_v30 = vsel %vm37_vm0, %v526_v29, 0.0 }
 0x5b2   :  { %v515_v7 = vpop.xlane.xlu2 %514  ;;  %535 = vadd.xlane.f32.xlu2 %v534_v30 }
 0x5b3   :  { %v519_v31 = vmul.f32 %v515_v7, %v807_v28 }
 0x5b5   :  { %v916_v32 = vsub.f32 %v503_v16, %v519_v31 }
 0x5b7   :  { %v527_v33 = vmul.f32 %v916_v32, %v916_v32 }
 0x5b9   :  { %v537_v35 = vsel %vm37_vm0, %v527_v33, 0.0 }
 0x5ba   :  { %538 = vadd.xlane.f32.xlu0 %v537_v35 }
 0x615   :  { %v530_v34 = vpop.xlane.xlu0 %529 }
 0x616   :  { %v540_v36 = vmul.f32 %v530_v34, %v807_v28 }
 0x618   :  { %v544_v37 = vadd.f32 1e-05, %v540_v36 }
 0x61a   :  { %679 = vrsqrt.f32 %v544_v37  ;;  %vm554_vm3 = vweird.f32 %v544_v37 }
 0x61d   :  { %v533_v38 = vpop.xlane.xlu1 %532 }
 0x61e   :  { %v541_v40 = vmul.f32 %v533_v38, %v807_v28 }
 0x620   :  { %v680_v41 = vpop.eup %679  ;;  %v545_v42 = vadd.f32 1e-05, %v541_v40 }
 0x621   :  { %v549_v43 = vmul.f32 %v680_v41, %v544_v37  ;;  %vm555_vm2 = vweird.f32 %v680_v41 }
 0x622   :  { %681 = vrsqrt.f32 %v545_v42  ;;  %vm556_vm4 = vmor %vm554_vm3, %vm555_vm2  ;;  %vm564_vm6 = vweird.f32 %v545_v42 }
 0x623   :  { %v550_v39 = vmul.f32 %v680_v41, %v549_v43 }
 0x625   :  { %v551_v45 = vmul.f32 0.5, %v550_v39  ;;  %v536_v44 = vpop.xlane.xlu2 %535 }
 0x626   :  { %v542_v46 = vmul.f32 %v536_v44, %v807_v28 }
 0x627   :  { %v552_v47 = vsub.f32 1.5, %v551_v45 }
 0x628   :  { %v682_v48 = vpop.eup %681  ;;  %v546_v49 = vadd.f32 1e-05, %v542_v46 }
 0x629   :  { %v553_v50 = vmul.f32 %v680_v41, %v552_v47  ;;  %v559_v51 = vmul.f32 %v682_v48, %v545_v42  ;;  %vm565_vm5 = vweird.f32 %v682_v48 }
 0x62a   :  { %683 = vrsqrt.f32 %v546_v49  ;;  %vm566_vm7 = vmor %vm564_vm6, %vm565_vm5  ;;  %vm574_vm9 = vweird.f32 %v546_v49 }
 0x62b   :  { %v557_v52 = vsel %vm556_vm4, %v680_v41, %v553_v50  ;;  %v560_v53 = vmul.f32 %v682_v48, %v559_v51 }
 0x62c   :  { %v588_v54 = vmul.f32 %v557_v52, %v520_v20 }
 0x62d   :  { %v561_v55 = vmul.f32 0.5, %v560_v53  ;;  %v539_v56 = vpop.xlane.xlu0 %538 }
 0x62e   :  { %v592_v57 = vmul.f32 %v851_v8, %v588_v54  ;;  %v543_v58 = vmul.f32 %v539_v56, %v807_v28 }
 0x62f   :  { %v562_v59 = vsub.f32 1.5, %v561_v55 }
 0x630   :  { %v684_v60 = vpop.eup %683  ;;  %v596_v61 = vadd.f32 %v860_v13, %v592_v57  ;;  %v547_v62 = vadd.f32 1e-05, %v543_v58 }
 0x631   :  { %v563_v63 = vmul.f32 %v682_v48, %v562_v59  ;;  %v569_v0 = vmul.f32 %v684_v60, %v546_v49  ;;  %vm575_vm8 = vweird.f32 %v684_v60 }
 0x632   :  { %600 = vst.msk [vmem:[%s959_s8] sm:$0xff] %vm37_vm0, %v596_v61  ;;  %685 = vrsqrt.f32 %v547_v62  ;;  %vm576_vm10 = vmor %vm574_vm9, %vm575_vm8  ;;  %vm584_vm12 = vweird.f32 %v547_v62 }
 0x633   :  { %v567_v1 = vsel %vm566_vm7, %v682_v48, %v563_v63  ;;  %v570_v2 = vmul.f32 %v684_v60, %v569_v0 }
 0x634   :  { %v589_v3 = vmul.f32 %v567_v1, %v521_v24 }
 0x635   :  { %v571_v28 = vmul.f32 0.5, %v570_v2 }
 0x636   :  { %v593_v9 = vmul.f32 %v851_v8, %v589_v3 }
 0x637   :  { %v572_v10 = vsub.f32 1.5, %v571_v28 }
 0x638   :  { %v686_v11 = vpop.eup %685  ;;  %v597_v12 = vadd.f32 %v860_v13, %v593_v9 }
 0x639   :  { %v573_v14 = vmul.f32 %v684_v60, %v572_v10  ;;  %v579_v15 = vmul.f32 %v686_v11, %v547_v62  ;;  %vm585_vm11 = vweird.f32 %v686_v11 }
 0x63a   :  { %601 = vst.msk [vmem:[%s959_s8 + $0x8] sm:$0xff] %vm37_vm0, %v597_v12  ;;  %vm586_vm13 = vmor %vm584_vm12, %vm585_vm11 }
 0x63b   :  { %v577_v16 = vsel %vm576_vm10, %v684_v60, %v573_v14  ;;  %v580_v17 = vmul.f32 %v686_v11, %v579_v15 }
 0x63c   :  { %v590_v18 = vmul.f32 %v577_v16, %v910_v6 }
 0x63d   :  { %v581_v19 = vmul.f32 0.5, %v580_v17 }
 0x63e   :  { %v594_v20 = vmul.f32 %v851_v8, %v590_v18 }
 0x63f   :  { %v582_v21 = vsub.f32 1.5, %v581_v19 }
 0x640   :  { %v598_v22 = vadd.f32 %v860_v13, %v594_v20 }
 0x641   :  { %v583_v4 = vmul.f32 %v686_v11, %v582_v21 }
 0x642   :  { %602 = vst.msk [vmem:[%s959_s8 + $0x10] sm:$0xff] %vm37_vm0, %v598_v22 }
 0x643   :  { %v587_v23 = vsel %vm586_vm13, %v686_v11, %v583_v4 }
 0x644   :  { %v591_v24 = vmul.f32 %v587_v23, %v916_v32 }
 0x646   :  { %v595_v25 = vmul.f32 %v851_v8, %v591_v24 }
 0x648   :  { %v599_v5 = vadd.f32 %v860_v13, %v595_v25 }
 0x64a   :  { %603 = vst.msk [vmem:[%s959_s8 + $0x18] sm:$0xff] %vm37_vm0, %v599_v5 }

</bundles_post_ra>
